<compile_context>
chip_gen: v7x
topology: tpu7x:2x2x1
jax: 0.10.0
libtpu: 0.0.40
codegen_flags: <defaults>
</compile_context>

<pallas_src>
import functools

import jax
import jax.numpy as jnp
from jax import lax
from jax.experimental import pallas as pl
from jax.experimental.pallas import tpu as pltpu


def _cdiv(a, b):
    return -(-a // b)


def _round_up(x, m):
    return _cdiv(x, m) * m


def _pick_fold(bc, hw, max_width=512):
    """Fold factor kf (a divisor of bc).

    For small spatial sizes (hw < 128) every vreg lane row is mostly empty;
    reshaping (bc, hw) -> (bc//kf, kf*hw) is free (rows are contiguous in HBM)
    and restores lane density.  Pick the largest divisor of bc with
    kf*hw <= max_width (wider rows also shrink the narrow per-row writeback).
    """
    if hw >= 128 or hw <= 0 or bc <= 1:
        return 1
    kmax = min(max_width // hw, bc)
    for kf in range(kmax, 1, -1):
        if bc % kf == 0:
            return kf
    return 1


def _choose_row_tile(rows, row_bytes, target_bytes, min_block_bytes=1 << 20,
                     want_tiles=8):
    """Rows per block: ~target_bytes per block, but prefer >= want_tiles row
    tiles (v7x megacore sharding + pipeline depth) as long as each block stays
    >= min_block_bytes (per-grid-step overhead is ~0.35 us)."""
    if rows * row_bytes <= min_block_bytes:
        return rows
    t_cap = max(8, (target_bytes // row_bytes) // 8 * 8)          # ~target blocks
    t_min = max(8, _round_up(_cdiv(min_block_bytes, row_bytes), 8))
    t_par = max(8, _round_up(_cdiv(rows, want_tiles), 8))          # >= want_tiles
    t = min(t_cap, max(t_par, t_min))
    return rows if t >= rows else t


def _pow_p(xc, p_ref, p_static):
    """xc ** p with xc > 0."""
    if p_static is None:
        p = p_ref[0]
        return jnp.exp(p * jnp.log(xc))        # EUP exp/log
    # Static integer exponent: square-and-multiply on the VPU (frees the EUP,
    # the binding VLIW slot for the dynamic path on v7x).
    e = int(p_static)
    result, base = None, xc
    while e > 0:
        if e & 1:
            result = base if result is None else result * base
        e >>= 1
        if e:
            base = base * base
    return result


def _pow_inv_p(m, p_ref, p_static):
    """m ** (1/p) with m > 0."""
    if p_static is None:
        p = p_ref[0]
        return jnp.exp(jnp.log(m) / p)
    e = int(p_static)
    if e == 1:
        return m
    if e == 2:
        return jnp.sqrt(m)
    if e == 4:
        return jnp.sqrt(jnp.sqrt(m))
    return jnp.exp(jnp.log(m) * (1.0 / float(e)))


def _gem_single_kernel(p_ref, x_ref, o_ref, *, eps, fold, hw, inv_hw, p_static):
    # p_ref: (1,) f32 SMEM.   x_ref: (tile_rows, fold*hw) VMEM.
    # o_ref: (tile_rows, fold) VMEM.  The whole (folded) row reduction fits in
    # this single block, so no accumulator scratch / init / finalize needed.
    x = x_ref[...].astype(jnp.float32)
    xc = jnp.maximum(x, eps)                                   # clamp(min=eps)
    xp = _pow_p(xc, p_ref, p_static)
    if fold == 1:
        s = jnp.sum(xp, axis=-1, keepdims=True)                # (tile_rows, 1)
    else:
        # Per-original-row segmented sums via a tiny block-diagonal-ones MXU
        # matmul: column j sums lanes [j*hw, (j+1)*hw).  MXU has huge slack.
        width = fold * hw
        r = lax.broadcasted_iota(jnp.int32, (width, fold), 0)
        c = lax.broadcasted_iota(jnp.int32, (width, fold), 1)
        ones_bd = ((r >= c * hw) & (r < (c + 1) * hw)).astype(jnp.float32)
        s = jnp.dot(xp, ones_bd, preferred_element_type=jnp.float32)
    m = s * jnp.float32(inv_hw)                                # mean over true H*W
    o_ref[...] = _pow_inv_p(m, p_ref, p_static).astype(o_ref.dtype)


def _gem_stream_kernel(p_ref, x_ref, o_ref, acc_ref, *, eps, hw, hw_tile,
                       inv_hw, p_static, needs_mask):
    # Grid: (row tiles "parallel", H*W reduction tiles "arbitrary", last).
    # acc_ref: (tile_rows, 1) f32 scratch, resident across the k axis.
    k = pl.program_id(1)

    @pl.when(k == 0)
    def _init():
        acc_ref[...] = jnp.zeros_like(acc_ref)

    x = x_ref[...].astype(jnp.float32)
    xc = jnp.maximum(x, eps)
    xp = _pow_p(xc, p_ref, p_static)
    if needs_mask:
        # The last reduction block sticks out past H*W; out-of-bounds lanes
        # hold garbage (possibly NaN/Inf), so *select* 0.0, don't multiply.
        col = lax.broadcasted_iota(jnp.int32, xp.shape, 1)
        limit = hw - k * hw_tile
        xp = jnp.where(col < limit, xp, 0.0)
    acc_ref[...] += jnp.sum(xp, axis=-1, keepdims=True)

    @pl.when(k == pl.num_programs(1) - 1)
    def _finalize():
        m = acc_ref[...] * jnp.float32(inv_hw)
        o_ref[...] = _pow_inv_p(m, p_ref, p_static).astype(o_ref.dtype)


def gem_pool2d(x, p, eps=1e-6, *, p_static=None,
               target_block_bytes=4 * 1024 * 1024):
    """GeM pooling forward.  x: (B, C, H, W), p: (1,) learnable exponent.

    Returns jnp.squeeze of the (B, C, 1, 1) pooled result, matching torch's
    .squeeze() (note: singleton B/C dims are dropped too).

    If `p_static` is given it MUST equal the runtime value of p (small
    positive integer); the kernel then replaces EUP exp/log with VPU
    multiplies (recommended on v7x at inference).
    """
    if p_static is not None:
        p_static = int(p_static)
        assert 1 <= p_static <= 8, p_static

    B, C, H, W = x.shape
    BC, HW = B * C, H * W
    itemsize = jnp.dtype(x.dtype).itemsize
    p32 = jnp.asarray(p, jnp.float32).reshape((1,))

    # Free reshape (rows contiguous in HBM): fold kf original rows together so
    # the lane dimension is dense even for tiny spatial sizes (e.g. 7x7).
    kf = _pick_fold(BC, HW)
    rows, width = BC // kf, kf * HW
    x2 = x.reshape(rows, width)
    row_bytes = width * itemsize

    if row_bytes * 8 <= target_block_bytes:
        # ---- whole (folded) row in one block: 1-D grid, no accumulator ----
        tile_rows = _choose_row_tile(rows, row_bytes, target_block_bytes)
        grid = (_cdiv(rows, tile_rows),)
        out = pl.pallas_call(
            functools.partial(_gem_single_kernel, eps=float(eps), fold=kf,
                              hw=HW, inv_hw=1.0 / HW, p_static=p_static),
            out_shape=jax.ShapeDtypeStruct((rows, kf), x.dtype),
            grid=grid,
            in_specs=[
                pl.BlockSpec(memory_space=pltpu.MemorySpace.SMEM),   # p scalar
                pl.BlockSpec((tile_rows, width), lambda i: (i, 0)),  # x rows
            ],
            out_specs=pl.BlockSpec((tile_rows, kf), lambda i: (i, 0)),
            compiler_params=pltpu.CompilerParams(
                dimension_semantics=("parallel",),
                vmem_limit_bytes=32 * 1024 * 1024),
        )(p32, x2)
    else:
        # ---- large H*W: stream the reduction over lane tiles (kf == 1) ----
        tile_rows = rows if rows <= 256 else 256
        raw = (target_block_bytes // (tile_rows * itemsize)) // 128 * 128
        hw_tile = min(max(raw, 128), width)
        grid = (_cdiv(rows, tile_rows), _cdiv(width, hw_tile))
        needs_mask = (width % hw_tile) != 0
        # NOTE(perf): for skinny-BC / huge-HW shapes grid[0] may be 1, leaving
        # one v7x TensorCore idle; splitting the reduction across cores would
        # need a second combining pass and is not done here.
        out = pl.pallas_call(
            functools.partial(_gem_stream_kernel, eps=float(eps), hw=width,
                              hw_tile=hw_tile, inv_hw=1.0 / HW,
                              p_static=p_static, needs_mask=needs_mask),
            out_shape=jax.ShapeDtypeStruct((rows, 1), x.dtype),
            grid=grid,
            in_specs=[
                pl.BlockSpec(memory_space=pltpu.MemorySpace.SMEM),        # p
                pl.BlockSpec((tile_rows, hw_tile), lambda i, k: (i, k)),  # x
            ],
            out_specs=pl.BlockSpec((tile_rows, 1), lambda i, k: (i, 0)),
            scratch_shapes=[pltpu.VMEM((tile_rows, 1), jnp.float32)],
            compiler_params=pltpu.CompilerParams(
                dimension_semantics=("parallel", "arbitrary"),
                vmem_limit_bytes=32 * 1024 * 1024),
        )(p32, x2)

    # torch .squeeze(): drops the pooled 1x1 spatial dims (and any singleton
    # batch/channel dims).
    return jnp.squeeze(out.reshape(B, C, 1, 1))


def _reference(x, p, eps=1e-6):
    xc = jnp.maximum(x, eps)
    xp = xc ** p[0]
    m = jnp.mean(xp, axis=(-2, -1), keepdims=True)
    return jnp.squeeze(m ** (1.0 / p[0]))


if __name__ == "__main__":
    key = jax.random.PRNGKey(0)
    B, C, H, W = 2, 4, 16, 16
    x = jax.random.normal(key, (B, C, H, W), dtype=jnp.float32)

    # nn.Parameter(torch.ones(1) * 3)
    p = jnp.ones((1,), dtype=jnp.float32) * 3.0
    eps = 1e-6

    ref = _reference(x, p, eps)

    # Dynamic-p path (learnable exponent, matches the nn.Module).
    out = jax.block_until_ready(gem_pool2d(x, p, eps))
    assert out.shape == ref.shape == (B, C), (out.shape, ref.shape)
    assert jnp.allclose(out, ref, rtol=1e-4, atol=1e-5)

    # Static-p fast path (VPU square-and-multiply instead of EUP exp/log).
    out_s = jax.block_until_ready(gem_pool2d(x, p, eps, p_static=3))
    assert jnp.allclose(out_s, ref, rtol=1e-4, atol=1e-5)

    # ResNet-style 7x7 spatial shape exercises the lane-fold (segmented-sum
    # MXU matmul) path; looser tolerance in case the f32 matmul is lowered
    # with reduced (bf16-pass) precision.
    x7 = jax.random.normal(jax.random.PRNGKey(1), (2, 4, 7, 7), jnp.float32)
    ref7 = _reference(x7, p, eps)
    out7 = jax.block_until_ready(gem_pool2d(x7, p, eps))
    assert out7.shape == ref7.shape
    assert jnp.allclose(out7, ref7, rtol=5e-3, atol=1e-3)

    # Non-tile-aligned spatial + artificially small blocks exercise the
    # streaming (multi-k, in-kernel tail-masked, accumulator) path.
    x9 = jax.random.normal(jax.random.PRNGKey(2), (2, 4, 60, 60), jnp.float32)
    ref9 = _reference(x9, p, eps)
    out9 = jax.block_until_ready(
        gem_pool2d(x9, p, eps, target_block_bytes=64 * 1024))
    assert out9.shape == ref9.shape
    assert jnp.allclose(out9, ref9, rtol=1e-4, atol=1e-5)

    print("KERNEL_OK")
</pallas_src>

<mosaic_0001>
module attributes {stable_mosaic.version = 11 : i64} {
  func.func @_gem_single_kernel(%arg0: i32, %arg1: memref<1xf32, #tpu.memory_space<smem>>, %arg2: memref<8x256xf32, #tpu.memory_space<vmem>>, %arg3: memref<8x1xf32, #tpu.memory_space<vmem>>) attributes {dimension_semantics = [#tpu.dimension_semantics<parallel>], iteration_bounds = array<i64: 1>, scalar_prefetch = 0 : i64, scratch_operands = 0 : i64, tpu.core_type = #tpu.core_type<tc>, window_params = [{transform_indices = @transform_0, window_bounds = array<i64: 1>}, {transform_indices = @transform_1, window_bounds = array<i64: 8, 256>}, {transform_indices = @transform_2, window_bounds = array<i64: 8, 1>}]} {
    %c0 = arith.constant 0 : index
    %c0_0 = arith.constant 0 : index
    %0 = vector.load %arg2[%c0, %c0_0] : memref<8x256xf32, #tpu.memory_space<vmem>>, vector<8x256xf32>
    %cst = arith.constant 9.99999997E-7 : f32
    %1 = vector.broadcast %cst : f32 to vector<8x256xf32>
    %2 = arith.maximumf %0, %1 : vector<8x256xf32>
    %c0_1 = arith.constant 0 : index
    %3 = memref.load %arg1[%c0_1] : memref<1xf32, #tpu.memory_space<smem>>
    %4 = math.log %2 : vector<8x256xf32>
    %5 = vector.broadcast %3 : f32 to vector<8x256xf32>
    %6 = arith.mulf %5, %4 : vector<8x256xf32>
    %7 = math.exp %6 : vector<8x256xf32>
    %cst_2 = arith.constant dense<0.000000e+00> : vector<8xf32>
    %8 = vector.multi_reduction <add>, %7, %cst_2 [1] : vector<8x256xf32> to vector<8xf32>
    %9 = vector.shape_cast %8 : vector<8xf32> to vector<8x1xf32>
    %cst_3 = arith.constant 3.906250e-03 : f32
    %10 = vector.broadcast %cst_3 : f32 to vector<8x1xf32>
    %11 = arith.mulf %9, %10 : vector<8x1xf32>
    %c0_4 = arith.constant 0 : index
    %12 = memref.load %arg1[%c0_4] : memref<1xf32, #tpu.memory_space<smem>>
    %13 = math.log %11 : vector<8x1xf32>
    %14 = vector.broadcast %12 : f32 to vector<8x1xf32>
    %15 = arith.divf %13, %14 : vector<8x1xf32>
    %16 = math.exp %15 : vector<8x1xf32>
    %c0_5 = arith.constant 0 : index
    %c0_6 = arith.constant 0 : index
    %17 = vector.load %arg3[%c0_5, %c0_6] : memref<8x1xf32, #tpu.memory_space<vmem>>, vector<8x1xf32>
    tpu.vector_store %arg3[%c0_5, %c0_6], %16 {strides = array<i32>} : memref<8x1xf32, #tpu.memory_space<vmem>>, vector<8x1xf32>,
    return
  }
  func.func @transform_0(%arg0: i32) -> i32 {
    %c0_i32 = arith.constant 0 : i32
    %c0_i32_0 = arith.constant 0 : i32
    return %c0_i32 : i32
  }
  func.func @transform_1(%arg0: i32) -> (i32, i32) {
    %c0_i32 = arith.constant 0 : i32
    %c0_i32_0 = arith.constant 0 : i32
    return %arg0, %c0_i32 : i32, i32
  }
  func.func @transform_2(%arg0: i32) -> (i32, i32) {
    %c0_i32 = arith.constant 0 : i32
    %c0_i32_0 = arith.constant 0 : i32
    return %arg0, %c0_i32 : i32, i32
  }
}

</mosaic_0001>

<bundles_post_ra>
// kernel: tpu_custom_call.1
= control target key start
LH: loop header
LB: loop body
LE: loop exit
PB: predicated region body
PF: predicated region fallthrough
CT: control target
= control target key end

     0   :  { %8 = vsyncpa [#allocation4], 0  ;;  %s96_s9 = smov [#allocation3]   ;;  %s130_s0 = inlined_call_operand.<no memory space> [shape: f32[1], index: 0, kind: input, shape index: {}]   ;;  %s131_s1 = inlined_call_operand.hbm [shape: f32[8,256], index: 1, kind: input, shape index: {}]   ;;  %s132_s2 = inlined_call_operand.vmem [shape: f32[8,1], index: 2, kind: output, shape index: {}]  }
   0x1   :  { %s17_s10 = sshll.u32 %s96_s9, 4  ;;  %s72_s13 = scalar_lea.hbm %s131_s1, 256  ;;  %s18_s10 = int_to_ptr.vmem [resolvable:$true] %s17_s10 }
   0x2   :  { %p73_p0 = scmp.ne.s32.totalorder %s131_s1, %s72_s13  ;;  %p76_p1 = scmp.lt.u32.totalorder %s72_s13, %s131_s1 }
   0x4   :  { %p78_p2 = pnand %p76_p1, %p73_p0 }
   0x6   :  { %81 = shalt.err (!%p78_p2)
}
   0x7   :  { %s82_s18 = scalar_lea.vmem %s18_s10, 256  ;;  %p87_p4 = scmp.lt.s32.totalorder %s18_s10, %s18_s10 }
   0x8   :  { %p83_p3 = scmp.ne.s32.totalorder %s18_s10, %s82_s18  ;;  %p88_p5 = scmp.lt.s32.totalorder %s82_s18, %s82_s18 }
   0xa   :  { %p89_p6 = por %p88_p5, %p87_p4 }
   0xc   :  { %p90_p7 = pnand %p89_p6, %p83_p3 }
   0xe   :  { %93 = shalt.err (!%p90_p7)
}
   0xf   :  { %20 = dma.hbm_to_vmem [thread:$0]  %s131_s1, 256, %s18_s10, [#allocation4]  }
  0x10   :  { %94 = dma.done.wait [#allocation4], 256  }
  0x11   :  { %95 = vsyncadd [#allocation4], 4294967040  ;;  %v24_v0 = vld [vmem:[#allocation3] sm:$0xff]  ;;  %v25_v1 = vld [vmem:[#allocation3 + $0x8] sm:$0xff]  ;;  %v33_v5 = vstv %s130_s0  ;;  %vm50_vm0 = vcmask 7168  }
  0x12   :  { %v26_v2 = vmax.f32 %v24_v0, 1e-06  ;;  %v27_v3 = vmax.f32 %v25_v1, 1e-06 }
  0x14   :  { %58 = vlog2.f32 %v26_v2 }
  0x15   :  { %60 = vlog2.f32 %v27_v3 }
  0x1e   :  { %v59_v4 = vpop.eup %58 }
  0x1f   :  { %v61_v6 = vpop.eup %60  ;;  %v30_v7 = vmul.f32 0.6931472, %v59_v4 }
  0x20   :  { %v32_v8 = vmul.f32 0.6931472, %v61_v6 }
  0x21   :  { %v34_v9 = vmul.f32 %v33_v5, %v30_v7 }
  0x22   :  { %v35_v10 = vmul.f32 %v33_v5, %v32_v8 }
  0x23   :  { %v36_v11 = vmul.f32 1.442695, %v34_v9 }
  0x24   :  { %v38_v12 = vmul.f32 1.442695, %v35_v10 }
  0x25   :  { %62 = vpow2.f32 %v36_v11 }
  0x26   :  { %64 = vpow2.f32 %v38_v12 }
  0x27   :  { %66 = vrcp.f32 %v33_v5 }
  0x2f   :  { %v63_v13 = vpop.eup %62 }
  0x30   :  { %v65_v14 = vpop.eup %64 }
  0x31   :  { %v40_v15 = vadd.f32 %v65_v14, %v63_v13  ;;  %v67_v18 = vpop.eup %66 }
  0x33   :  { %41 = vadd.xlane.f32.xlu0 %v40_v15 }
  0xc0   :  { %v42_v16 = vpop.xlane.xlu0 %41 }
  0xc1   :  { %v43_v17 = vmul.f32 0.00390625, %v42_v16 }
  0xc3   :  { %68 = vlog2.f32 %v43_v17 }
  0xcd   :  { %v69_v19 = vpop.eup %68 }
  0xce   :  { %v45_v20 = vmul.f32 0.6931472, %v69_v19 }
  0xd0   :  { %v47_v21 = vmul.f32 %v67_v18, %v45_v20 }
  0xd2   :  { %v48_v22 = vmul.f32 1.442695, %v47_v21 }
  0xd4   :  { %70 = vpow2.f32 %v48_v22 }
  0xde   :  { %v71_v23 = vpop.eup %70 }
  0xdf   :  { %51 = vst.msk [vmem:[%s132_s2] sm:$0xff] %vm50_vm0, %v71_v23 }
  0xe0   :  { %56 = vsyncpa [#allocation4], 1 }

</bundles_post_ra>
